<compile_context>
chip_gen: v5e
topology: v5e:2x2
jax: 0.10.0
libtpu: 0.0.40
codegen_flags: <defaults>
</compile_context>

<pallas_src>
from functools import partial

import jax
import jax.numpy as jnp
from jax import lax
from jax.experimental import pallas as pl
from jax.experimental.pallas import tpu as pltpu


def _round_up(x, m):
    return -(-x // m) * m


def _pick_chunk(hw, rows, itemsize, *, target_bytes=2 << 20, max_lanes=None):
    """Lane-chunk along the flattened spatial axis.

    Sized against *padded* block bytes (sublane dim of a (1, rows, chunk)
    block pads to 8/16/32 depending on dtype).  Returns either the full
    extent `hw` (single chunk, no tail) or a multiple of 128 <= hw
    (cdiv grid + masked tail handling).
    """
    sub_tile = 8 * max(1, 4 // max(1, itemsize))            # 8 f32 / 16 bf16 / 32 i8
    padded_rows = _round_up(max(rows, 1), sub_tile)
    limit = max(128, (target_bytes // (padded_rows * itemsize)) // 128 * 128)
    if max_lanes is not None:
        limit = min(limit, max(128, (max_lanes // 128) * 128))
    if hw <= limit:
        return hw
    return limit


# ----------------------------------------------------------------------------
# Kernel 1: noised = input + noise * sigma   (sigma per-batch, SMEM prefetch).
# ----------------------------------------------------------------------------
def _noise_kernel(sig_ref, x_ref, n_ref, o_ref):
    sig = sig_ref[pl.program_id(0)]                          # scalar sigma (SMEM)
    o_ref[...] = (x_ref[...].astype(jnp.float32)
                  + n_ref[...].astype(jnp.float32) * sig).astype(o_ref.dtype)


def get_noised_input(input_, noise, sigmas, *, max_lanes=None):
    """input_, noise: (B, C, H, W); sigmas: (B,). Returns (B, C, H, W)."""
    B, C, H, W = input_.shape
    HW = H * W
    chunk = _pick_chunk(HW, C, jnp.dtype(input_.dtype).itemsize,
                        max_lanes=max_lanes)
    n_chunks = -(-HW // chunk)

    x = input_.reshape(B, C, HW)
    n = noise.reshape(B, C, HW)
    sig = sigmas.astype(jnp.float32)

    out = pl.pallas_call(
        _noise_kernel,
        out_shape=jax.ShapeDtypeStruct((B, C, HW), input_.dtype),
        grid_spec=pltpu.PrefetchScalarGridSpec(
            num_scalar_prefetch=1,
            grid=(B, n_chunks),
            in_specs=[
                pl.BlockSpec((1, C, chunk), lambda b, j, sig: (b, 0, j)),
                pl.BlockSpec((1, C, chunk), lambda b, j, sig: (b, 0, j)),
            ],
            out_specs=pl.BlockSpec((1, C, chunk), lambda b, j, sig: (b, 0, j)),
        ),
        compiler_params=pltpu.CompilerParams(
            dimension_semantics=("parallel", "parallel"),
            vmem_limit_bytes=48 * 1024 * 1024),
    )(sig, x, n)
    return out.reshape(B, C, H, W)


# ----------------------------------------------------------------------------
# Kernel 2: l2 loss with mask reweighting / per-image mask normalization.
#
#   torch:  m = (mask.repeat(1,4,1,1)+1)/2*(reweight-1)+1
#           m = m / mean(m, dim=(2,3), keepdim=True)
#           loss_b = mean_{c,h,w}( m * w * (pred - target)^2 )
#
#   Since the channel repeat copies identical values this is algebraically
#           loss_b = w_b * sum_{hw}( m'(hw) * sum_c d^2 ) / (C * sum_{hw} m'(hw))
#   with m' = mask*a + (a+1), a = (reweight-1)/2.  Per-(b, partition) partial
#   sums are produced by the kernel; the final fold happens in the wrapper.
# ----------------------------------------------------------------------------
def _l2_loss_kernel(mask_ref, pred_ref, tgt_ref, summ_ref, sumsq_ref,
                    acc_m_ref, acc_sq_ref, *, a, b_const, hw, chunk,
                    chunks_per_part, needs_mask):
    p = pl.program_id(1)                  # spatial partition (megacore axis)
    j = pl.program_id(2)                  # chunk inside the partition
    last_j = pl.num_programs(2) - 1       # hoisted: no pl.* inside pl.when bodies

    @pl.when(j == 0)
    def _init():
        acc_m_ref[...] = jnp.zeros_like(acc_m_ref)
        acc_sq_ref[...] = jnp.zeros_like(acc_sq_ref)

    m = mask_ref[0].astype(jnp.float32) * a + b_const                     # (1, chunk)
    d = pred_ref[0].astype(jnp.float32) - tgt_ref[0].astype(jnp.float32)  # (C, chunk)
    d2c = jnp.sum(d * d, axis=0, keepdims=True)                           # (1, chunk)
    sq = m * d2c                                                          # (1, chunk)
    if needs_mask:                        # ragged tail / over-partitioned blocks
        off = (p * chunks_per_part + j) * chunk
        lane = lax.broadcasted_iota(jnp.int32, m.shape, 1)
        valid = (off + lane) < hw
        m = jnp.where(valid, m, 0.0)
        sq = jnp.where(valid, sq, 0.0)
    acc_m_ref[...] += jnp.sum(m, keepdims=True)                           # (1, 1)
    acc_sq_ref[...] += jnp.sum(sq, keepdims=True)                         # (1, 1)

    @pl.when(j == last_j)
    def _finalize():
        summ_ref[0, 0] = acc_m_ref[0, 0]
        sumsq_ref[0, 0] = acc_sq_ref[0, 0]


def get_loss_l2(model_output, target, w, mask, reweight, *,
                max_lanes=None, n_par=2):
    """model_output, target: (B, C, H, W); w: (B,); mask: (B, 1, H, W) -> (B,)."""
    B, C, H, W = target.shape
    HW = H * W
    itemsize = max(jnp.dtype(model_output.dtype).itemsize,
                   jnp.dtype(target.dtype).itemsize)
    chunk = _pick_chunk(HW, C, itemsize, max_lanes=max_lanes)
    n_chunks = -(-HW // chunk)
    n_par = max(1, min(n_par, n_chunks))
    cpp = -(-n_chunks // n_par)           # chunks per spatial partition
    needs_mask = (HW % chunk != 0) or (n_par * cpp != n_chunks)

    pred = model_output.reshape(B, C, HW)
    tgt = target.reshape(B, C, HW)
    msk = mask.reshape(B, 1, HW)

    a = 0.5 * (float(reweight) - 1.0)
    kernel = partial(_l2_loss_kernel, a=a, b_const=a + 1.0, hw=HW, chunk=chunk,
                     chunks_per_part=cpp, needs_mask=needs_mask)

    sum_m, sum_sq = pl.pallas_call(
        kernel,
        out_shape=(jax.ShapeDtypeStruct((B, n_par), jnp.float32),
                   jax.ShapeDtypeStruct((B, n_par), jnp.float32)),
        grid_spec=pltpu.PrefetchScalarGridSpec(
            num_scalar_prefetch=0,
            grid=(B, n_par, cpp),
            in_specs=[
                pl.BlockSpec((1, 1, chunk), lambda b, p, j: (b, 0, p * cpp + j)),
                pl.BlockSpec((1, C, chunk), lambda b, p, j: (b, 0, p * cpp + j)),
                pl.BlockSpec((1, C, chunk), lambda b, p, j: (b, 0, p * cpp + j)),
            ],
            out_specs=(
                pl.BlockSpec((1, 1), lambda b, p, j: (b, p),
                             memory_space=pltpu.SMEM),
                pl.BlockSpec((1, 1), lambda b, p, j: (b, p),
                             memory_space=pltpu.SMEM),
            ),
            scratch_shapes=[
                pltpu.VMEM((1, 1), jnp.float32),   # running sum of m'
                pltpu.VMEM((1, 1), jnp.float32),   # running sum of m' * sum_c d^2
            ],
        ),
        compiler_params=pltpu.CompilerParams(
            dimension_semantics=("parallel", "parallel", "arbitrary"),
            vmem_limit_bytes=48 * 1024 * 1024),
    )(msk, pred, tgt)

    w32 = w.astype(jnp.float32)
    return w32 * jnp.sum(sum_sq, axis=1) / (C * jnp.sum(sum_m, axis=1))


# ----------------------------------------------------------------------------
# Module wrapper (glue in plain JAX).
# ----------------------------------------------------------------------------
class StandardDiffusionLoss:
    def __init__(self, loss_type="l2", offset_noise_level=0.0, reweight=1.0,
                 p_mean=-1.2, p_std=1.2, batch2model_keys=("mask_fuse",)):
        assert loss_type in ("l2",)  # TODO(synk): l1 / lpips paths not kernelized
        self.loss_type = loss_type
        self.offset_noise_level = offset_noise_level
        self.reweight = reweight
        # sigma_sampler (EDM sampling) parameters — deterministic, in-script.
        self.p_mean = p_mean
        self.p_std = p_std
        self.batch2model_keys = set(batch2model_keys)

    # --- stand-ins for instantiate_from_config'd sub-modules -----------------
    def sigma_sampler(self, n, key):
        log_sigma = self.p_mean + self.p_std * jax.random.normal(key, (n,))
        return jnp.exp(log_sigma).astype(jnp.float32)

    def loss_weighting(self, sigmas):
        return sigmas ** -2.0  # EpsWeighting

    # --------------------------------------------------------------------------
    def get_noised_input(self, sigmas, noise, input_):
        return get_noised_input(input_, noise, sigmas)

    def get_loss(self, model_output, target, w, mask):
        return get_loss_l2(model_output, target, w, mask, self.reweight)

    def __call__(self, denoiser, input_, input_3d, batch, key):
        additional_model_inputs = {
            k: batch[k] for k in self.batch2model_keys.intersection(batch)
        }
        k_noise, k_noise3d, k_sigma = jax.random.split(key, 3)
        noise = jax.random.normal(k_noise, input_.shape, input_.dtype)
        noise_3d = jax.random.normal(k_noise3d, input_3d.shape, input_3d.dtype)

        sigmas_3d = self.sigma_sampler(input_3d.shape[0], k_sigma)
        sigmas = sigmas_3d[batch["indices_3d"]]
        # offset_noise_level == 0.0 -> no offset noise branch

        noised_input = self.get_noised_input(sigmas, noise, input_)
        noised_input_3d = self.get_noised_input(sigmas_3d, noise_3d, input_3d)

        model_output, _ = denoiser(noised_input, noised_input_3d, sigmas, sigmas_3d)

        w = self.loss_weighting(sigmas)
        return self.get_loss(model_output, input_, w,
                             additional_model_inputs["mask_fuse"])


# ----------------------------------------------------------------------------
# Pure-JAX reference (mirrors the PyTorch math) for verification.
# ----------------------------------------------------------------------------
def _ref_loss(model_output, target, w, mask, reweight):
    m = jnp.tile(mask, (1, 4, 1, 1))
    m = (m + 1.0) / 2.0 * (reweight - 1.0) + 1.0
    m = m / jnp.mean(m, axis=(2, 3), keepdims=True)
    val = m * w.reshape(-1, 1, 1, 1) * (model_output - target) ** 2
    return jnp.mean(val.reshape(target.shape[0], -1), axis=1)


if __name__ == "__main__":
    B, C, H, W = 2, 4, 16, 16
    key = jax.random.PRNGKey(0)
    k_in, k_in3d, k_mask, k_fwd = jax.random.split(key, 4)

    input_ = jax.random.normal(k_in, (B, C, H, W), jnp.float32)
    input_3d = jax.random.normal(k_in3d, (B, C, H, W), jnp.float32)
    mask_fuse = jax.random.uniform(k_mask, (B, 1, H, W), jnp.float32,
                                   minval=-1.0, maxval=1.0)
    batch = {"mask_fuse": mask_fuse, "indices_3d": jnp.arange(B)}

    # TODO(synk): real network/denoiser are external modules; simple EDM-style
    # preconditioned identity denoiser used as a deterministic stand-in.
    def denoiser(noised, noised_3d, sigmas, sigmas_3d):
        c_skip = 1.0 / (1.0 + sigmas.reshape(-1, 1, 1, 1) ** 2)
        return noised * c_skip, noised_3d

    loss_mod = StandardDiffusionLoss(loss_type="l2", reweight=2.0)
    loss = jax.block_until_ready(loss_mod(denoiser, input_, input_3d, batch, k_fwd))

    # --- verify against the pure-JAX reference (same RNG stream) -------------
    k_noise, _, k_sigma = jax.random.split(k_fwd, 3)
    noise = jax.random.normal(k_noise, input_.shape, input_.dtype)
    sigmas = loss_mod.sigma_sampler(B, k_sigma)[batch["indices_3d"]]
    sig_bc = sigmas.reshape(-1, 1, 1, 1)
    noised_ref = input_ + noise * sig_bc
    model_out_ref = noised_ref / (1.0 + sig_bc ** 2)
    ref = _ref_loss(model_out_ref, input_, sigmas ** -2.0, mask_fuse, 2.0)

    assert loss.shape == (B,)
    assert jnp.allclose(loss, ref, rtol=1e-5, atol=1e-5), (loss, ref)

    # --- multi-chunk + 2-partition path (chunk=128 -> 2 chunks) --------------
    noised_chunked = jax.block_until_ready(
        get_noised_input(input_, noise, sigmas, max_lanes=128))
    assert jnp.allclose(noised_chunked, noised_ref, rtol=1e-6, atol=1e-6)
    loss_chunked = jax.block_until_ready(
        get_loss_l2(model_out_ref, input_, sigmas ** -2.0, mask_fuse, 2.0,
                    max_lanes=128))
    assert jnp.allclose(loss_chunked, ref, rtol=1e-5, atol=1e-5), (loss_chunked, ref)

    # --- ragged spatial extent (HW=130): cdiv grid + in-kernel tail mask -----
    Hr, Wr = 10, 13
    kr1, kr2, kr3 = jax.random.split(jax.random.PRNGKey(1), 3)
    pred_r = jax.random.normal(kr1, (B, C, Hr, Wr), jnp.float32)
    tgt_r = jax.random.normal(kr2, (B, C, Hr, Wr), jnp.float32)
    mask_r = jax.random.uniform(kr3, (B, 1, Hr, Wr), jnp.float32,
                                minval=-1.0, maxval=1.0)
    ref_r = _ref_loss(pred_r, tgt_r, sigmas ** -2.0, mask_r, 2.0)
    for ml in (None, 128):
        loss_r = jax.block_until_ready(
            get_loss_l2(pred_r, tgt_r, sigmas ** -2.0, mask_r, 2.0, max_lanes=ml))
        assert jnp.allclose(loss_r, ref_r, rtol=1e-5, atol=1e-5), (ml, loss_r, ref_r)
    noised_r = jax.block_until_ready(
        get_noised_input(pred_r, tgt_r, sigmas, max_lanes=128))
    assert jnp.allclose(noised_r, pred_r + tgt_r * sig_bc, rtol=1e-6, atol=1e-6)

    print("KERNEL_OK")
</pallas_src>

<mosaic_0001>
module attributes {stable_mosaic.version = 11 : i64} {
  func.func @_noise_kernel(%arg0: i32, %arg1: i32, %arg2: memref<2xf32, #tpu.memory_space<smem>>, %arg3: memref<1x4x256xf32, #tpu.memory_space<vmem>>, %arg4: memref<1x4x256xf32, #tpu.memory_space<vmem>>, %arg5: memref<1x4x256xf32, #tpu.memory_space<vmem>>) attributes {dimension_semantics = [#tpu.dimension_semantics<parallel>, #tpu.dimension_semantics<parallel>], iteration_bounds = array<i64: 2, 1>, scalar_prefetch = 1 : i64, scratch_operands = 0 : i64, tpu.core_type = #tpu.core_type<tc>, window_params = [{transform_indices = @transform_0, window_bounds = array<i64: 1, 4, 256>}, {transform_indices = @transform_1, window_bounds = array<i64: 1, 4, 256>}, {transform_indices = @transform_2, window_bounds = array<i64: 1, 4, 256>}]} {
    %0 = arith.index_cast %arg0 : i32 to index
    %1 = memref.load %arg2[%0] : memref<2xf32, #tpu.memory_space<smem>>
    %c0 = arith.constant 0 : index
    %c0_0 = arith.constant 0 : index
    %c0_1 = arith.constant 0 : index
    %2 = vector.load %arg3[%c0, %c0_0, %c0_1] : memref<1x4x256xf32, #tpu.memory_space<vmem>>, vector<1x4x256xf32>
    %c0_2 = arith.constant 0 : index
    %c0_3 = arith.constant 0 : index
    %c0_4 = arith.constant 0 : index
    %3 = vector.load %arg4[%c0_2, %c0_3, %c0_4] : memref<1x4x256xf32, #tpu.memory_space<vmem>>, vector<1x4x256xf32>
    %4 = vector.broadcast %1 : f32 to vector<1x4x256xf32>
    %5 = arith.mulf %3, %4 : vector<1x4x256xf32>
    %6 = arith.addf %2, %5 : vector<1x4x256xf32>
    %c0_5 = arith.constant 0 : index
    %c0_6 = arith.constant 0 : index
    %c0_7 = arith.constant 0 : index
    %7 = vector.load %arg5[%c0_5, %c0_6, %c0_7] : memref<1x4x256xf32, #tpu.memory_space<vmem>>, vector<1x4x256xf32>
    tpu.vector_store %arg5[%c0_5, %c0_6, %c0_7], %6 {strides = array<i32>} : memref<1x4x256xf32, #tpu.memory_space<vmem>>, vector<1x4x256xf32>,
    return
  }
  func.func @transform_0(%arg0: i32, %arg1: i32, %arg2: memref<2xf32, #tpu.memory_space<smem>>) -> (i32, i32, i32) {
    %c0_i32 = arith.constant 0 : i32
    %c0_i32_0 = arith.constant 0 : i32
    return %arg0, %c0_i32, %arg1 : i32, i32, i32
  }
  func.func @transform_1(%arg0: i32, %arg1: i32, %arg2: memref<2xf32, #tpu.memory_space<smem>>) -> (i32, i32, i32) {
    %c0_i32 = arith.constant 0 : i32
    %c0_i32_0 = arith.constant 0 : i32
    return %arg0, %c0_i32, %arg1 : i32, i32, i32
  }
  func.func @transform_2(%arg0: i32, %arg1: i32, %arg2: memref<2xf32, #tpu.memory_space<smem>>) -> (i32, i32, i32) {
    %c0_i32 = arith.constant 0 : i32
    %c0_i32_0 = arith.constant 0 : i32
    return %arg0, %c0_i32, %arg1 : i32, i32, i32
  }
}

</mosaic_0001>

<bundles_post_ra>
// kernel: tpu_custom_call.1
= control target key start
LH: loop header
LB: loop body
LE: loop exit
PB: predicated region body
PF: predicated region fallthrough
CT: control target
= control target key end

     0   :  { %s624_s15 = smov [#allocation3]   ;;  %s777_s0 = inlined_call_operand.hbm [shape: f32[2], index: 0, kind: input, shape index: {}]   ;;  %s778_s1 = inlined_call_operand.hbm [shape: f32[2,4,256], index: 1, kind: input, shape index: {}]   ;;  %s779_s2 = inlined_call_operand.hbm [shape: f32[2,4,256], index: 2, kind: input, shape index: {}]   ;;  %s780_s3 = inlined_call_operand.hbm [shape: f32[2,4,256], index: 3, kind: output, shape index: {}]  }
   0x1   :  { %s9_s14 = sshll.u32 %s777_s0, 4  ;;  %s10_s14 = int_to_ptr.hbm [resolvable:$true] %s9_s14 }
   0x2   :  { %12 = dma.hbm_to_smem %s10_s14, 16, %s624_s15, [#allocation2] }
   0x3   :  { %586 = dma.done.wait [#allocation2], 16 }
   0x4   :  { %587 = vsyncadd [#allocation2], 4294967280 }
   0x5   :  { %15 = sfence }
   0x6   :  { %16 = vsyncpa [#allocation5], 0 }
   0x7   :  { %18 = vsyncpa [#allocation5 + $0x1], 0 }
   0x8   :  { %19 = vsyncpa [#allocation8], 0 }
   0x9   :  { %21 = vsyncpa [#allocation8 + $0x1], 0 }
   0xa   :  { %22 = vsyncpa [#allocation6], 0 }
   0xb   :  { %24 = vsyncpa [#allocation6 + $0x1], 0  ;;  %s648_s16 = smov 0   ;;  %s650_s17 = smov 0  }
   0xc   :  { %s652_s18 = smov 0   ;;  %s654_s19 = smov 0  }
   0xd   :  { %s656_s0 = smov 0   ;;  %s658_s20 = smov 0  }
   0xe LB: > { %s372_s21 = sadd.s32 4294967295, %s622_s20   ;;  %s373_s22 = sadd.s32 4294967294, %s622_s20   ;;  %s622_s20 = sphi %s658_s20, %s30_s20   ;;  %s618_s0 = sphi %s656_s0, %s789_s0   ;;  %s614_s19 = sphi %s654_s19, %s788_s19   ;;  %s610_s18 = sphi %s652_s18, %s787_s18   ;;  %s606_s17 = sphi %s650_s17, %s786_s17   ;;  %s602_s16 = sphi %s648_s16, %s785_s16  }
   0xf   : > { %s42_s23 = sadd.s32 1, %s618_s0  ;;  %s51_s24 = sadd.s32 1, %s610_s18 }
  0x10   : > { %p44_p0 = scmp.ge.s32.totalorder %s42_s23, 2  ;;  %p58_p1 = scmp.ne.s32.totalorder %s610_s18, %s606_s17 }
  0x11   : > { %p59_p2 = scmp.eq.s32.totalorder %s622_s20, 0  ;;  %p64_p3 = scmp.ne.s32.totalorder %s606_s17, %s602_s16 }
  0x12   : > { %s791_s23 = smov (%p44_p0, %s42_s23), 0  ;;  %p65_p5 = scmp.eq.s32.totalorder %s372_s21, 0 }
  0x13   : > { %p689_p4 = por %p59_p2, %p58_p1  ;;  %s46_s26 = ssub.s32 %s618_s0, %s791_s23 }
  0x14   : > { %p118_p6 = scmp.eq.s32.totalorder %s372_s21, 1  ;;  %p49_p7 = scmp.eq.s32.totalorder %s46_s26, 0 }
  0x15   : > { %p695_p8 = por %p65_p5, %p64_p3  ;;  %p124_p10 = scmp.eq.s32.totalorder %s373_s22, 1 }
  0x16   : > { %p699_p9 = por %p118_p6, %p58_p1  ;;  %p375_p12 = scmp.ge.s32.totalorder %s622_s20, 2 }
  0x17   : > { %s704_s29 = scalar_select %p49_p7, %s610_s18, %s51_s24  }
  0x18   : > { %p706_p11 = por %p124_p10, %p64_p3  ;;  %p411_p13 = scmp.lt.s32.totalorder %s622_s20, 2 }
  0x19   : > { %s144_s4 = sand.u32 1, %s610_s18   ;;  %s391_s6 = sshll.u32 %s618_s0, 3 }
  0x1a   : > { %s376_s5 = sshll.u32 %s144_s4, 3  ;;  %s155_s9 = scalar_lea.hbm %s778_s1, %s391_s6 }
  0x1b   : > { %s148_s10 = scalar_lea.vmem [#allocation4], %s376_s5  ;;  %s157_s12 = sshll.u32 %s155_s9, 4  ;;  %s158_s12 = int_to_ptr.hbm [resolvable:$true] %s157_s12 }
  0x1c   : > { %s159_s11 = sshll.u32 %s148_s10, 4  ;;  %p401_p0 = pnand %p411_p13, %p689_p4  ;;  %s160_s11 = int_to_ptr.vmem [resolvable:$true] %s159_s11 }
  0x1d   : > { %p382_p1 = scmp.ge.s32.totalorder %s622_s20, 1  ;;  %p186_p2 = scmp.lt.s32.totalorder %s622_s20, 3 }
  0x1e   : > { %s145_s13 = scalar_lea.sflag [#allocation5], %s144_s4  ;;  %s177_s21 = scalar_lea.hbm %s779_s2, %s391_s6 }
  0x1f   : > { %403 = dma.hbm_to_vmem [thread:$0]  (!%p401_p0), %s158_s12, 128, %s160_s11, %s145_s13  }
  0x20   : > { %p187_p3 = pnand %p382_p1, %p186_p2  ;;  %s170_s22 = scalar_lea.vmem [#allocation7], %s376_s5 }
  0x21   : > { %s181_s24 = sshll.u32 %s170_s22, 4  ;;  %s179_s26 = sshll.u32 %s177_s21, 4  ;;  %s182_s24 = int_to_ptr.vmem [resolvable:$true] %s181_s24  ;;  %s180_s26 = int_to_ptr.hbm [resolvable:$true] %s179_s26 }
  0x22   : > { %s167_s7 = scalar_lea.sflag [#allocation8], %s144_s4  ;;  %190 = sbr.rel (%p187_p3) target bundleno = 57 (0x39), region = 28 }
  0x23   : > { %406 = dma.hbm_to_vmem [thread:$0]  (!%p401_p0), %s180_s26, 128, %s182_s24, %s167_s7  }
  0x24   : > { %s725_s25 = sand.u32 (!%p187_p3), 1, %s606_s17  }
  0x25   : > { %s383_s8 = sshll.u32 (!%p187_p3), %s725_s25, 3  ;;  %s193_s9 = scalar_lea.sflag (!%p187_p3), [#allocation5], %s725_s25 }
  0x26   : > { %s196_s10 = scalar_lea.vmem (!%p187_p3), [#allocation4], %s383_s8 }
  0x27   : > { %589 = dma.done.wait (%p695_p8), %s193_s9, 128  }
  0x28   : > { %591 = vsyncadd (%p695_p8), %s193_s9, 4294967168  ;;  %s203_s5 = scalar_lea.sflag [#allocation8], %s725_s25  ;;  %s206_s4 = scalar_lea.vmem [#allocation7], %s383_s8 }
  0x29   : > { %593 = dma.done.wait (%p695_p8), %s203_s5, 128  }
  0x2a   : > { %595 = vsyncadd (%p695_p8), %s203_s5, 4294967168  ;;  %s236_s6 = sld [smem:[#allocation3 + %s614_s19]]  ;;  %s393_s11 = sshll.u32 %s614_s19, 3  ;;  %v237_v0 = vld [vmem:[%s196_s10] sm:$0xff]  ;;  %v238_v1 = vld [vmem:[%s206_s4] sm:$0xff] }
  0x2b   : > { %s257_s14 = scalar_lea.hbm %s780_s3, %s393_s11  ;;  %s232_s15 = scalar_lea.vmem [#allocation9], %s383_s8 }
  0x2c   : > { %s259_s21 = sshll.u32 %s232_s15, 4  ;;  %s261_s22 = sshll.u32 %s257_s14, 4  ;;  %s260_s21 = int_to_ptr.vmem [resolvable:$true] %s259_s21  ;;  %s262_s22 = int_to_ptr.hbm [resolvable:$true] %s261_s22 }
  0x2d   : > { %s244_s27 = scalar_lea.sflag [#allocation6], %s725_s25  ;;  %s548_s24 = sshra.s32 %s262_s22, 4  ;;  %s549_s24 = int_to_ptr.hbm [resolvable:$true] %s548_s24 }
  0x2e   : > { %s550_s19 = scalar_lea.hbm %s549_s24, 8  ;;  %s554_s9 = scalar_lea.hbm %s780_s3, 16 }
  0x2f   : > { %p551_p4 = scmp.ne.s32.totalorder %s549_s24, %s550_s19  ;;  %p555_p7 = scmp.lt.s32.totalorder %s549_s24, %s780_s3 }
  0x30   : > { %v239_v2 = vstv %s236_s6  ;;  %p556_p8 = scmp.lt.s32.totalorder %s554_s9, %s550_s19 }
  0x31   : > { %v240_v3 = vmul.f32 %v239_v2, %v238_v1  ;;  %p552_p5 = pnand %p551_p4, %p699_p9 }
  0x32   : > { %p557_p10 = por %p556_p8, %p555_p7 }
  0x33   : > { %v241_v4 = vadd.f32 %v240_v3, %v237_v0  ;;  %p553_p6 = pneg %p552_p5 }
  0x35   : > { %242 = vst [vmem:[%s232_s15] sm:$0xff] %v241_v4  ;;  %p558_p13 = pnand %p557_p10, %p553_p6 }
  0x37   : > { %561 = shalt.err (!%p558_p13)
}
  0x38   : > { %398 = dma.vmem_to_hbm [thread:$0]  (%p699_p9), %s260_s21, 128, %s262_s22, %s244_s27  }
  0x39 PF: > { %s273_s25 = sand.u32 1, %s602_s16   ;;  %p408_p0 = pnand %p375_p12, %p706_p11 }
  0x3a   : > { %s274_s5 = scalar_lea.sflag [#allocation6], %s273_s25 }
  0x3b   : > { %p409_p1 = pneg %p408_p0 }
  0x3d   : > { %597 = dma.done.wait (%p409_p1), %s274_s5, 128  }
  0x3e   : > { %599 = vsyncadd (%p409_p1), %s274_s5, 4294967168  ;;  %s30_s20 = sadd.s32 1, %s622_s20   ;;  %s785_s16 = smov %s606_s17 }
  0x3f   : > { %p27_p2 = scmp.ge.s32.totalorder %s30_s20, 4   ;;  %s786_s17 = smov %s610_s18 }
  0x40   : > { %s787_s18 = smov %s704_s29  ;;  %s788_s19 = smov %s618_s0 }
  0x41   : > { %s789_s0 = smov %s791_s23  ;;  %29 = sbr.rel (!%p27_p2) target bundleno = 14 (0xe), region = 86 }
  0x46   :  { %280 = vsyncpa [#allocation5], 1 }
  0x47   :  { %282 = vsyncpa [#allocation5 + $0x1], 1 }
  0x48   :  { %283 = vsyncpa [#allocation8], 1 }
  0x49   :  { %285 = vsyncpa [#allocation8 + $0x1], 1 }
  0x4a   :  { %286 = vsyncpa [#allocation6], 1 }
  0x4b   :  { %288 = vsyncpa [#allocation6 + $0x1], 1 }

</bundles_post_ra>
